<compile_context>
chip_gen: v6e
topology: v6e:2x2x1
jax: 0.10.0
libtpu: 0.0.40
codegen_flags: <defaults>
</compile_context>

<pallas_src>
import functools

import numpy as np
import jax
import jax.numpy as jnp
from jax.experimental import pallas as pl
from jax.experimental.pallas import tpu as pltpu


def _round_up(a, b):
    return (a + b - 1) // b * b


def _fused_resblock_kernel(x_ref, w1_ref, w2_ref, out_ref, xpad_ref, col_ref,
                           *, H, W):
    """One image: y = conv2(relu(conv1(x))) + x, entirely in VMEM/vregs.

    x_ref   : (1, C, L)       activations, channels on sublanes, H*W on lanes
    w*_ref  : (CP, KP)        flattened conv weights, bias folded into column 9*C,
                              zero-padded to sublane/row multiples of 8
    out_ref : (1, C, L)
    xpad_ref: (C, L + 2W + 2) VMEM scratch: zero-padded flat line buffer
    col_ref : (KP, L)         VMEM scratch: im2col matrix (+ ones bias row)
    """
    C = x_ref.shape[1]
    L = H * W
    PAD = W + 1          # left/right zero strip of the flat line buffer
    K = 9 * C            # real im2col rows; row K is the bias (ones) row
    KP = col_ref.shape[0]

    # Column-validity masks for the horizontal taps (exact SAME zero padding).
    lane = jax.lax.broadcasted_iota(jnp.int32, (1, L), dimension=1)
    colx = lane % W
    mask_l = (colx >= 1).astype(jnp.float32)       # tap dx-offset = -1
    mask_r = (colx <= W - 2).astype(jnp.float32)   # tap dx-offset = +1

    # Zero the padded line buffer once; the pad strips are never written below,
    # so they provide the implicit top/bottom (and part of left/right) padding.
    xpad_ref[...] = jnp.zeros_like(xpad_ref)
    # Constant rows of the im2col matrix: bias row (ones) + K-padding rows (zeros).
    col_ref[K:K + 1, :] = jnp.ones((1, L), jnp.float32)
    if KP > K + 1:
        col_ref[K + 1:KP, :] = jnp.zeros((KP - K - 1, L), jnp.float32)

    def conv3x3(v, w_ref):
        # v: (C, L) f32.  Build the masked-shifted tap stack in col_ref and do a
        # single (CP, KP) x (KP, L) MXU matmul (bias included via the ones row).
        xpad_ref[:, PAD:PAD + L] = v
        for dy in range(3):
            for dx in range(3):
                t = dy * 3 + dx
                off = (dy - 1) * W + (dx - 1)          # flat offset of this tap
                tap = xpad_ref[:, PAD + off:PAD + off + L]   # zero-filled shift
                if dx == 0:
                    tap = tap * mask_l                 # kill row-wrap for ox=-1
                elif dx == 2:
                    tap = tap * mask_r                 # kill row-wrap for ox=+1
                col_ref[t * C:(t + 1) * C, :] = tap
        y = jnp.dot(w_ref[...], col_ref[...], preferred_element_type=jnp.float32)
        return y[:C]                                   # drop C_out zero-padding rows

    x = x_ref[0].astype(jnp.float32)                   # (C, L)
    h = jnp.maximum(conv3x3(x, w1_ref), 0.0)           # block1 + ReLU
    y = conv3x3(h, w2_ref) + x_ref[0].astype(jnp.float32)   # block2 + residual
    out_ref[0] = y.astype(out_ref.dtype)


@jax.jit
def resnet_block_light(x_nchw, w1_oihw, b1, w2_oihw, b2):
    """Forward pass of ResnetBlock_light; input/output are NCHW (PyTorch layout)."""
    N, C, H, W = x_nchw.shape
    L = H * W
    K = 9 * C
    KP = _round_up(K + 1, 8)     # im2col rows (+bias) padded to a sublane multiple
    CP = _round_up(C, 8)         # C_out padded to a sublane multiple

    x_flat = x_nchw.reshape(N, C, L)                   # free contiguous reshape

    def pack_weights(w_oihw, b):
        # OIHW -> (O, kh, kw, I) -> (O, 9*I); bias folded in as an extra column.
        w_flat = jnp.transpose(w_oihw, (0, 2, 3, 1)).reshape(C, K).astype(jnp.float32)
        w_aug = jnp.zeros((CP, KP), jnp.float32)
        w_aug = w_aug.at[:C, :K].set(w_flat)
        w_aug = w_aug.at[:C, K].set(b.astype(jnp.float32))
        return w_aug

    w1_aug = pack_weights(w1_oihw, b1)
    w2_aug = pack_weights(w2_oihw, b2)

    kernel = functools.partial(_fused_resblock_kernel, H=H, W=W)

    out_flat = pl.pallas_call(
        kernel,
        out_shape=jax.ShapeDtypeStruct((N, C, L), x_nchw.dtype),
        grid=(N,),
        in_specs=[
            pl.BlockSpec((1, C, L), lambda n: (n, 0, 0)),   # one image / grid step
            pl.BlockSpec((CP, KP), lambda n: (0, 0)),       # conv1 weights+bias
            pl.BlockSpec((CP, KP), lambda n: (0, 0)),       # conv2 weights+bias
        ],
        out_specs=pl.BlockSpec((1, C, L), lambda n: (n, 0, 0)),
        scratch_shapes=[
            pltpu.VMEM((C, L + 2 * (W + 1)), jnp.float32),  # padded line buffer
            pltpu.VMEM((KP, L), jnp.float32),               # im2col matrix
        ],
        compiler_params=pltpu.CompilerParams(
            dimension_semantics=("parallel",)),             # batch axis parallel
    )(x_flat, w1_aug, w2_aug)

    return out_flat.reshape(N, C, H, W)


def _reference_numpy(x, w1, b1, w2, b2):
    """Exact float64 NumPy reference with PyTorch nn.Conv2d(3,1,1) semantics."""
    def conv(x, w, b):
        n, c, h, ww = x.shape
        xp = np.pad(x, ((0, 0), (0, 0), (1, 1), (1, 1)))
        y = np.zeros((n, w.shape[0], h, ww), x.dtype)
        for o in range(w.shape[0]):
            for i in range(c):
                for dy in range(3):
                    for dx in range(3):
                        y[:, o] += w[o, i, dy, dx] * xp[:, i, dy:dy + h, dx:dx + ww]
        return y + b.reshape(1, -1, 1, 1)
    h = np.maximum(conv(x, w1, b1), 0.0)
    return conv(h, w2, b2) + x


if __name__ == "__main__":
    N, C, H, W = 2, 4, 16, 16

    key = jax.random.PRNGKey(0)
    kx, kw1, kb1, kw2, kb2 = jax.random.split(key, 5)

    # Deterministic synthetic parameters (PyTorch-style uniform init bounds).
    fan_in = C * 3 * 3
    bound = 1.0 / (fan_in ** 0.5)
    x = jax.random.normal(kx, (N, C, H, W), dtype=jnp.float32)
    w1 = jax.random.uniform(kw1, (C, C, 3, 3), jnp.float32, -bound, bound)
    b1 = jax.random.uniform(kb1, (C,), jnp.float32, -bound, bound)
    w2 = jax.random.uniform(kw2, (C, C, 3, 3), jnp.float32, -bound, bound)
    b2 = jax.random.uniform(kb2, (C,), jnp.float32, -bound, bound)

    out = jax.block_until_ready(resnet_block_light(x, w1, b1, w2, b2))

    ref = _reference_numpy(np.asarray(x, np.float64), np.asarray(w1, np.float64),
                           np.asarray(b1, np.float64), np.asarray(w2, np.float64),
                           np.asarray(b2, np.float64))
    err = float(np.max(np.abs(np.asarray(out, np.float64) - ref)))

    assert out.shape == (N, C, H, W), out.shape
    # Tolerance sized to cover worst-case MXU f32 pass emulation; with full f32
    # matmul precision the observed error is ~1e-6.  Any padding/tap/bias/residual
    # bug would produce O(0.1..1) errors and fail this check.
    assert err < 2e-2, f"max abs err {err}"

    print("KERNEL_OK")
</pallas_src>

<mosaic_0001>
module attributes {stable_mosaic.version = 11 : i64} {
  func.func @_fused_resblock_kernel(%arg0: i32, %arg1: memref<1x4x256xf32, #tpu.memory_space<vmem>>, %arg2: memref<8x40xf32, #tpu.memory_space<vmem>>, %arg3: memref<8x40xf32, #tpu.memory_space<vmem>>, %arg4: memref<1x4x256xf32, #tpu.memory_space<vmem>>, %arg5: memref<4x290xf32, #tpu.memory_space<vmem>>, %arg6: memref<40x256xf32, #tpu.memory_space<vmem>>) attributes {dimension_semantics = [#tpu.dimension_semantics<parallel>], iteration_bounds = array<i64: 2>, scalar_prefetch = 0 : i64, scratch_operands = 2 : i64, tpu.core_type = #tpu.core_type<tc>, window_params = [{transform_indices = @transform_0, window_bounds = array<i64: 1, 4, 256>}, {pipeline_mode = #tpu.pipeline_mode<synchronous>, transform_indices = @transform_1, window_bounds = array<i64: 8, 40>}, {pipeline_mode = #tpu.pipeline_mode<synchronous>, transform_indices = @transform_2, window_bounds = array<i64: 8, 40>}, {transform_indices = @transform_3, window_bounds = array<i64: 1, 4, 256>}]} {
    %0 = tpu.iota {dimensions = array<i32: 1>} : vector<1x256xi32>
    %c16_i32 = arith.constant 16 : i32
    %c0_i32 = arith.constant 0 : i32
    %1 = arith.cmpi eq, %c16_i32, %c0_i32 : i32
    %c1_i32 = arith.constant 1 : i32
    %2 = arith.select %1, %c1_i32, %c16_i32 : i32
    %3 = vector.broadcast %2 : i32 to vector<1x256xi32>
    %4 = arith.remsi %0, %3 : vector<1x256xi32>
    %c0_i32_0 = arith.constant 0 : i32
    %5 = vector.broadcast %c0_i32_0 : i32 to vector<1x256xi32>
    %6 = arith.cmpi ne, %4, %5 : vector<1x256xi32>
    %c0_i32_1 = arith.constant 0 : i32
    %7 = vector.broadcast %c0_i32_1 : i32 to vector<1x256xi32>
    %8 = arith.cmpi slt, %4, %7 : vector<1x256xi32>
    %c0_i32_2 = arith.constant 0 : i32
    %9 = arith.cmpi slt, %2, %c0_i32_2 : i32
    %10 = vector.broadcast %9 : i1 to vector<1x256xi1>
    %11 = vector.broadcast %10 : vector<1x256xi1> to vector<1x256xi1>
    %12 = arith.xori %8, %11 : vector<1x256xi1>
    %13 = arith.andi %12, %6 : vector<1x256xi1>
    %14 = vector.broadcast %2 : i32 to vector<1x256xi32>
    %15 = arith.addi %4, %14 : vector<1x256xi32>
    %16 = arith.select %13, %15, %4 : vector<1x256xi1>, vector<1x256xi32>
    %c1_i32_3 = arith.constant 1 : i32
    %17 = vector.broadcast %c1_i32_3 : i32 to vector<1x256xi32>
    %18 = arith.cmpi sge, %16, %17 : vector<1x256xi32>
    %19 = arith.extui %18 : vector<1x256xi1> to vector<1x256xi32>
    %20 = arith.sitofp %19 : vector<1x256xi32> to vector<1x256xf32>
    %c14_i32 = arith.constant 14 : i32
    %21 = vector.broadcast %c14_i32 : i32 to vector<1x256xi32>
    %22 = arith.cmpi sle, %16, %21 : vector<1x256xi32>
    %23 = arith.extui %22 : vector<1x256xi1> to vector<1x256xi32>
    %24 = arith.sitofp %23 : vector<1x256xi32> to vector<1x256xf32>
    %cst = arith.constant 0.000000e+00 : f32
    %25 = vector.broadcast %cst : f32 to vector<4x290xf32>
    %c0 = arith.constant 0 : index
    %c0_4 = arith.constant 0 : index
    %26 = vector.load %arg5[%c0, %c0_4] : memref<4x290xf32, #tpu.memory_space<vmem>>, vector<4x290xf32>
    tpu.vector_store %arg5[%c0, %c0_4], %25 {strides = array<i32>} : memref<4x290xf32, #tpu.memory_space<vmem>>, vector<4x290xf32>,
    %cst_5 = arith.constant 1.000000e+00 : f32
    %27 = vector.broadcast %cst_5 : f32 to vector<1x256xf32>
    %c36 = arith.constant 36 : index
    %c0_6 = arith.constant 0 : index
    %28 = vector.load %arg6[%c36, %c0_6] : memref<40x256xf32, #tpu.memory_space<vmem>>, vector<1x256xf32>
    tpu.vector_store %arg6[%c36, %c0_6], %27 {strides = array<i32>} : memref<40x256xf32, #tpu.memory_space<vmem>>, vector<1x256xf32>,
    %cst_7 = arith.constant 0.000000e+00 : f32
    %29 = vector.broadcast %cst_7 : f32 to vector<3x256xf32>
    %c37 = arith.constant 37 : index
    %c0_8 = arith.constant 0 : index
    %30 = vector.load %arg6[%c37, %c0_8] : memref<40x256xf32, #tpu.memory_space<vmem>>, vector<3x256xf32>
    tpu.vector_store %arg6[%c37, %c0_8], %29 {strides = array<i32>} : memref<40x256xf32, #tpu.memory_space<vmem>>, vector<3x256xf32>,
    %c0_9 = arith.constant 0 : index
    %c0_10 = arith.constant 0 : index
    %c0_11 = arith.constant 0 : index
    %31 = vector.load %arg1[%c0_9, %c0_10, %c0_11] : memref<1x4x256xf32, #tpu.memory_space<vmem>>, vector<1x4x256xf32>
    %32 = vector.shape_cast %31 : vector<1x4x256xf32> to vector<4x256xf32>
    %c0_12 = arith.constant 0 : index
    %c17 = arith.constant 17 : index
    %33 = vector.load %arg5[%c0_12, %c17] : memref<4x290xf32, #tpu.memory_space<vmem>>, vector<4x256xf32>
    tpu.vector_store %arg5[%c0_12, %c17], %32 {strides = array<i32>} : memref<4x290xf32, #tpu.memory_space<vmem>>, vector<4x256xf32>,
    %c0_13 = arith.constant 0 : index
    %c0_14 = arith.constant 0 : index
    %34 = vector.load %arg5[%c0_13, %c0_14] : memref<4x290xf32, #tpu.memory_space<vmem>>, vector<4x256xf32>
    %35 = vector.broadcast %20 : vector<1x256xf32> to vector<4x256xf32>
    %36 = arith.mulf %34, %35 : vector<4x256xf32>
    %c0_15 = arith.constant 0 : index
    %c0_16 = arith.constant 0 : index
    %37 = vector.load %arg6[%c0_15, %c0_16] : memref<40x256xf32, #tpu.memory_space<vmem>>, vector<4x256xf32>
    tpu.vector_store %arg6[%c0_15, %c0_16], %36 {strides = array<i32>} : memref<40x256xf32, #tpu.memory_space<vmem>>, vector<4x256xf32>,
    %c0_17 = arith.constant 0 : index
    %c1 = arith.constant 1 : index
    %38 = vector.load %arg5[%c0_17, %c1] : memref<4x290xf32, #tpu.memory_space<vmem>>, vector<4x256xf32>
    %c4 = arith.constant 4 : index
    %c0_18 = arith.constant 0 : index
    %39 = vector.load %arg6[%c4, %c0_18] : memref<40x256xf32, #tpu.memory_space<vmem>>, vector<4x256xf32>
    tpu.vector_store %arg6[%c4, %c0_18], %38 {strides = array<i32>} : memref<40x256xf32, #tpu.memory_space<vmem>>, vector<4x256xf32>,
    %c0_19 = arith.constant 0 : index
    %c2 = arith.constant 2 : index
    %40 = vector.load %arg5[%c0_19, %c2] : memref<4x290xf32, #tpu.memory_space<vmem>>, vector<4x256xf32>
    %41 = vector.broadcast %24 : vector<1x256xf32> to vector<4x256xf32>
    %42 = arith.mulf %40, %41 : vector<4x256xf32>
    %c8 = arith.constant 8 : index
    %c0_20 = arith.constant 0 : index
    %43 = vector.load %arg6[%c8, %c0_20] : memref<40x256xf32, #tpu.memory_space<vmem>>, vector<4x256xf32>
    tpu.vector_store %arg6[%c8, %c0_20], %42 {strides = array<i32>} : memref<40x256xf32, #tpu.memory_space<vmem>>, vector<4x256xf32>,
    %c0_21 = arith.constant 0 : index
    %c16 = arith.constant 16 : index
    %44 = vector.load %arg5[%c0_21, %c16] : memref<4x290xf32, #tpu.memory_space<vmem>>, vector<4x256xf32>
    %45 = vector.broadcast %20 : vector<1x256xf32> to vector<4x256xf32>
    %46 = arith.mulf %44, %45 : vector<4x256xf32>
    %c12 = arith.constant 12 : index
    %c0_22 = arith.constant 0 : index
    %47 = vector.load %arg6[%c12, %c0_22] : memref<40x256xf32, #tpu.memory_space<vmem>>, vector<4x256xf32>
    tpu.vector_store %arg6[%c12, %c0_22], %46 {strides = array<i32>} : memref<40x256xf32, #tpu.memory_space<vmem>>, vector<4x256xf32>,
    %c0_23 = arith.constant 0 : index
    %c17_24 = arith.constant 17 : index
    %48 = vector.load %arg5[%c0_23, %c17_24] : memref<4x290xf32, #tpu.memory_space<vmem>>, vector<4x256xf32>
    %c16_25 = arith.constant 16 : index
    %c0_26 = arith.constant 0 : index
    %49 = vector.load %arg6[%c16_25, %c0_26] : memref<40x256xf32, #tpu.memory_space<vmem>>, vector<4x256xf32>
    tpu.vector_store %arg6[%c16_25, %c0_26], %48 {strides = array<i32>} : memref<40x256xf32, #tpu.memory_space<vmem>>, vector<4x256xf32>,
    %c0_27 = arith.constant 0 : index
    %c18 = arith.constant 18 : index
    %50 = vector.load %arg5[%c0_27, %c18] : memref<4x290xf32, #tpu.memory_space<vmem>>, vector<4x256xf32>
    %51 = vector.broadcast %24 : vector<1x256xf32> to vector<4x256xf32>
    %52 = arith.mulf %50, %51 : vector<4x256xf32>
    %c20 = arith.constant 20 : index
    %c0_28 = arith.constant 0 : index
    %53 = vector.load %arg6[%c20, %c0_28] : memref<40x256xf32, #tpu.memory_space<vmem>>, vector<4x256xf32>
    tpu.vector_store %arg6[%c20, %c0_28], %52 {strides = array<i32>} : memref<40x256xf32, #tpu.memory_space<vmem>>, vector<4x256xf32>,
    %c0_29 = arith.constant 0 : index
    %c32 = arith.constant 32 : index
    %54 = vector.load %arg5[%c0_29, %c32] : memref<4x290xf32, #tpu.memory_space<vmem>>, vector<4x256xf32>
    %55 = vector.broadcast %20 : vector<1x256xf32> to vector<4x256xf32>
    %56 = arith.mulf %54, %55 : vector<4x256xf32>
    %c24 = arith.constant 24 : index
    %c0_30 = arith.constant 0 : index
    %57 = vector.load %arg6[%c24, %c0_30] : memref<40x256xf32, #tpu.memory_space<vmem>>, vector<4x256xf32>
    tpu.vector_store %arg6[%c24, %c0_30], %56 {strides = array<i32>} : memref<40x256xf32, #tpu.memory_space<vmem>>, vector<4x256xf32>,
    %c0_31 = arith.constant 0 : index
    %c33 = arith.constant 33 : index
    %58 = vector.load %arg5[%c0_31, %c33] : memref<4x290xf32, #tpu.memory_space<vmem>>, vector<4x256xf32>
    %c28 = arith.constant 28 : index
    %c0_32 = arith.constant 0 : index
    %59 = vector.load %arg6[%c28, %c0_32] : memref<40x256xf32, #tpu.memory_space<vmem>>, vector<4x256xf32>
    tpu.vector_store %arg6[%c28, %c0_32], %58 {strides = array<i32>} : memref<40x256xf32, #tpu.memory_space<vmem>>, vector<4x256xf32>,
    %c0_33 = arith.constant 0 : index
    %c34 = arith.constant 34 : index
    %60 = vector.load %arg5[%c0_33, %c34] : memref<4x290xf32, #tpu.memory_space<vmem>>, vector<4x256xf32>
    %61 = vector.broadcast %24 : vector<1x256xf32> to vector<4x256xf32>
    %62 = arith.mulf %60, %61 : vector<4x256xf32>
    %c32_34 = arith.constant 32 : index
    %c0_35 = arith.constant 0 : index
    %63 = vector.load %arg6[%c32_34, %c0_35] : memref<40x256xf32, #tpu.memory_space<vmem>>, vector<4x256xf32>
    tpu.vector_store %arg6[%c32_34, %c0_35], %62 {strides = array<i32>} : memref<40x256xf32, #tpu.memory_space<vmem>>, vector<4x256xf32>,
    %c0_36 = arith.constant 0 : index
    %c0_37 = arith.constant 0 : index
    %64 = vector.load %arg2[%c0_36, %c0_37] : memref<8x40xf32, #tpu.memory_space<vmem>>, vector<8x40xf32>
    %c0_38 = arith.constant 0 : index
    %c0_39 = arith.constant 0 : index
    %65 = vector.load %arg6[%c0_38, %c0_39] : memref<40x256xf32, #tpu.memory_space<vmem>>, vector<40x256xf32>
    %cst_40 = arith.constant dense<0.000000e+00> : vector<8x256xf32>
    %66 = tpu.matmul %64, %65, %cst_40 {dimension_numbers = #tpu.dot_dimension_numbers<[1], [0], [0], [1], [0, 0, 1, 1], [], []>} : vector<8x40xf32>, vector<40x256xf32>, vector<8x256xf32> -> vector<8x256xf32>
    %67 = vector.extract_strided_slice %66 {offsets = [0, 0], sizes = [4, 256], strides = [1, 1]} : vector<8x256xf32> to vector<4x256xf32>
    %cst_41 = arith.constant 0.000000e+00 : f32
    %68 = vector.broadcast %cst_41 : f32 to vector<4x256xf32>
    %69 = arith.maximumf %67, %68 : vector<4x256xf32>
    %c0_42 = arith.constant 0 : index
    %c17_43 = arith.constant 17 : index
    %70 = vector.load %arg5[%c0_42, %c17_43] : memref<4x290xf32, #tpu.memory_space<vmem>>, vector<4x256xf32>
    tpu.vector_store %arg5[%c0_42, %c17_43], %69 {strides = array<i32>} : memref<4x290xf32, #tpu.memory_space<vmem>>, vector<4x256xf32>,
    %c0_44 = arith.constant 0 : index
    %c0_45 = arith.constant 0 : index
    %71 = vector.load %arg5[%c0_44, %c0_45] : memref<4x290xf32, #tpu.memory_space<vmem>>, vector<4x256xf32>
    %72 = vector.broadcast %20 : vector<1x256xf32> to vector<4x256xf32>
    %73 = arith.mulf %71, %72 : vector<4x256xf32>
    %c0_46 = arith.constant 0 : index
    %c0_47 = arith.constant 0 : index
    %74 = vector.load %arg6[%c0_46, %c0_47] : memref<40x256xf32, #tpu.memory_space<vmem>>, vector<4x256xf32>
    tpu.vector_store %arg6[%c0_46, %c0_47], %73 {strides = array<i32>} : memref<40x256xf32, #tpu.memory_space<vmem>>, vector<4x256xf32>,
    %c0_48 = arith.constant 0 : index
    %c1_49 = arith.constant 1 : index
    %75 = vector.load %arg5[%c0_48, %c1_49] : memref<4x290xf32, #tpu.memory_space<vmem>>, vector<4x256xf32>
    %c4_50 = arith.constant 4 : index
    %c0_51 = arith.constant 0 : index
    %76 = vector.load %arg6[%c4_50, %c0_51] : memref<40x256xf32, #tpu.memory_space<vmem>>, vector<4x256xf32>
    tpu.vector_store %arg6[%c4_50, %c0_51], %75 {strides = array<i32>} : memref<40x256xf32, #tpu.memory_space<vmem>>, vector<4x256xf32>,
    %c0_52 = arith.constant 0 : index
    %c2_53 = arith.constant 2 : index
    %77 = vector.load %arg5[%c0_52, %c2_53] : memref<4x290xf32, #tpu.memory_space<vmem>>, vector<4x256xf32>
    %78 = vector.broadcast %24 : vector<1x256xf32> to vector<4x256xf32>
    %79 = arith.mulf %77, %78 : vector<4x256xf32>
    %c8_54 = arith.constant 8 : index
    %c0_55 = arith.constant 0 : index
    %80 = vector.load %arg6[%c8_54, %c0_55] : memref<40x256xf32, #tpu.memory_space<vmem>>, vector<4x256xf32>
    tpu.vector_store %arg6[%c8_54, %c0_55], %79 {strides = array<i32>} : memref<40x256xf32, #tpu.memory_space<vmem>>, vector<4x256xf32>,
    %c0_56 = arith.constant 0 : index
    %c16_57 = arith.constant 16 : index
    %81 = vector.load %arg5[%c0_56, %c16_57] : memref<4x290xf32, #tpu.memory_space<vmem>>, vector<4x256xf32>
    %82 = vector.broadcast %20 : vector<1x256xf32> to vector<4x256xf32>
    %83 = arith.mulf %81, %82 : vector<4x256xf32>
    %c12_58 = arith.constant 12 : index
    %c0_59 = arith.constant 0 : index
    %84 = vector.load %arg6[%c12_58, %c0_59] : memref<40x256xf32, #tpu.memory_space<vmem>>, vector<4x256xf32>
    tpu.vector_store %arg6[%c12_58, %c0_59], %83 {strides = array<i32>} : memref<40x256xf32, #tpu.memory_space<vmem>>, vector<4x256xf32>,
    %c0_60 = arith.constant 0 : index
    %c17_61 = arith.constant 17 : index
    %85 = vector.load %arg5[%c0_60, %c17_61] : memref<4x290xf32, #tpu.memory_space<vmem>>, vector<4x256xf32>
    %c16_62 = arith.constant 16 : index
    %c0_63 = arith.constant 0 : index
    %86 = vector.load %arg6[%c16_62, %c0_63] : memref<40x256xf32, #tpu.memory_space<vmem>>, vector<4x256xf32>
    tpu.vector_store %arg6[%c16_62, %c0_63], %85 {strides = array<i32>} : memref<40x256xf32, #tpu.memory_space<vmem>>, vector<4x256xf32>,
    %c0_64 = arith.constant 0 : index
    %c18_65 = arith.constant 18 : index
    %87 = vector.load %arg5[%c0_64, %c18_65] : memref<4x290xf32, #tpu.memory_space<vmem>>, vector<4x256xf32>
    %88 = vector.broadcast %24 : vector<1x256xf32> to vector<4x256xf32>
    %89 = arith.mulf %87, %88 : vector<4x256xf32>
    %c20_66 = arith.constant 20 : index
    %c0_67 = arith.constant 0 : index
    %90 = vector.load %arg6[%c20_66, %c0_67] : memref<40x256xf32, #tpu.memory_space<vmem>>, vector<4x256xf32>
    tpu.vector_store %arg6[%c20_66, %c0_67], %89 {strides = array<i32>} : memref<40x256xf32, #tpu.memory_space<vmem>>, vector<4x256xf32>,
    %c0_68 = arith.constant 0 : index
    %c32_69 = arith.constant 32 : index
    %91 = vector.load %arg5[%c0_68, %c32_69] : memref<4x290xf32, #tpu.memory_space<vmem>>, vector<4x256xf32>
    %92 = vector.broadcast %20 : vector<1x256xf32> to vector<4x256xf32>
    %93 = arith.mulf %91, %92 : vector<4x256xf32>
    %c24_70 = arith.constant 24 : index
    %c0_71 = arith.constant 0 : index
    %94 = vector.load %arg6[%c24_70, %c0_71] : memref<40x256xf32, #tpu.memory_space<vmem>>, vector<4x256xf32>
    tpu.vector_store %arg6[%c24_70, %c0_71], %93 {strides = array<i32>} : memref<40x256xf32, #tpu.memory_space<vmem>>, vector<4x256xf32>,
    %c0_72 = arith.constant 0 : index
    %c33_73 = arith.constant 33 : index
    %95 = vector.load %arg5[%c0_72, %c33_73] : memref<4x290xf32, #tpu.memory_space<vmem>>, vector<4x256xf32>
    %c28_74 = arith.constant 28 : index
    %c0_75 = arith.constant 0 : index
    %96 = vector.load %arg6[%c28_74, %c0_75] : memref<40x256xf32, #tpu.memory_space<vmem>>, vector<4x256xf32>
    tpu.vector_store %arg6[%c28_74, %c0_75], %95 {strides = array<i32>} : memref<40x256xf32, #tpu.memory_space<vmem>>, vector<4x256xf32>,
    %c0_76 = arith.constant 0 : index
    %c34_77 = arith.constant 34 : index
    %97 = vector.load %arg5[%c0_76, %c34_77] : memref<4x290xf32, #tpu.memory_space<vmem>>, vector<4x256xf32>
    %98 = vector.broadcast %24 : vector<1x256xf32> to vector<4x256xf32>
    %99 = arith.mulf %97, %98 : vector<4x256xf32>
    %c32_78 = arith.constant 32 : index
    %c0_79 = arith.constant 0 : index
    %100 = vector.load %arg6[%c32_78, %c0_79] : memref<40x256xf32, #tpu.memory_space<vmem>>, vector<4x256xf32>
    tpu.vector_store %arg6[%c32_78, %c0_79], %99 {strides = array<i32>} : memref<40x256xf32, #tpu.memory_space<vmem>>, vector<4x256xf32>,
    %c0_80 = arith.constant 0 : index
    %c0_81 = arith.constant 0 : index
    %101 = vector.load %arg3[%c0_80, %c0_81] : memref<8x40xf32, #tpu.memory_space<vmem>>, vector<8x40xf32>
    %c0_82 = arith.constant 0 : index
    %c0_83 = arith.constant 0 : index
    %102 = vector.load %arg6[%c0_82, %c0_83] : memref<40x256xf32, #tpu.memory_space<vmem>>, vector<40x256xf32>
    %cst_84 = arith.constant dense<0.000000e+00> : vector<8x256xf32>
    %103 = tpu.matmul %101, %102, %cst_84 {dimension_numbers = #tpu.dot_dimension_numbers<[1], [0], [0], [1], [0, 0, 1, 1], [], []>} : vector<8x40xf32>, vector<40x256xf32>, vector<8x256xf32> -> vector<8x256xf32>
    %104 = vector.extract_strided_slice %103 {offsets = [0, 0], sizes = [4, 256], strides = [1, 1]} : vector<8x256xf32> to vector<4x256xf32>
    %c0_85 = arith.constant 0 : index
    %c0_86 = arith.constant 0 : index
    %c0_87 = arith.constant 0 : index
    %105 = vector.load %arg1[%c0_85, %c0_86, %c0_87] : memref<1x4x256xf32, #tpu.memory_space<vmem>>, vector<1x4x256xf32>
    %106 = vector.shape_cast %105 : vector<1x4x256xf32> to vector<4x256xf32>
    %107 = arith.addf %104, %106 : vector<4x256xf32>
    %c0_88 = arith.constant 0 : index
    %c0_89 = arith.constant 0 : index
    %c0_90 = arith.constant 0 : index
    %108 = vector.load %arg4[%c0_88, %c0_89, %c0_90] : memref<1x4x256xf32, #tpu.memory_space<vmem>>, vector<1x4x256xf32>
    %109 = vector.shape_cast %108 : vector<1x4x256xf32> to vector<4x256xf32>
    %110 = vector.shape_cast %107 : vector<4x256xf32> to vector<1x4x256xf32>
    tpu.vector_store %arg4[%c0_88, %c0_89, %c0_90], %110 {strides = array<i32>} : memref<1x4x256xf32, #tpu.memory_space<vmem>>, vector<1x4x256xf32>,
    return
  }
  func.func @transform_0(%arg0: i32) -> (i32, i32, i32) {
    %c0_i32 = arith.constant 0 : i32
    %c0_i32_0 = arith.constant 0 : i32
    %c0_i32_1 = arith.constant 0 : i32
    return %arg0, %c0_i32, %c0_i32_0 : i32, i32, i32
  }
  func.func @transform_1(%arg0: i32) -> (i32, i32) {
    %c0_i32 = arith.constant 0 : i32
    %c0_i32_0 = arith.constant 0 : i32
    %c0_i32_1 = arith.constant 0 : i32
    return %c0_i32, %c0_i32_0 : i32, i32
  }
  func.func @transform_2(%arg0: i32) -> (i32, i32) {
    %c0_i32 = arith.constant 0 : i32
    %c0_i32_0 = arith.constant 0 : i32
    %c0_i32_1 = arith.constant 0 : i32
    return %c0_i32, %c0_i32_0 : i32, i32
  }
  func.func @transform_3(%arg0: i32) -> (i32, i32, i32) {
    %c0_i32 = arith.constant 0 : i32
    %c0_i32_0 = arith.constant 0 : i32
    %c0_i32_1 = arith.constant 0 : i32
    return %arg0, %c0_i32, %c0_i32_0 : i32, i32, i32
  }
}

</mosaic_0001>

<bundles_post_ra>
// kernel: resnet_block_light.1
= control target key start
LH: loop header
LB: loop body
LE: loop exit
PB: predicated region body
PF: predicated region fallthrough
CT: control target
= control target key end

     0   :  { %s946_s12 = smov 0   ;;  %s1144_s0 = inlined_call_operand.vmem [shape: f32[2,4,256], index: 0, kind: input, shape index: {}]   ;;  %s1145_s1 = inlined_call_operand.vmem [shape: f32[8,40], index: 1, kind: input, shape index: {}]   ;;  %s1146_s2 = inlined_call_operand.vmem [shape: f32[8,40], index: 2, kind: input, shape index: {}]   ;;  %s1147_s3 = inlined_call_operand.vmem [shape: f32[2,4,256], index: 3, kind: output, shape index: {}]  }
   0x1 LB: > { %s851_s13 = sadd.s32 4294967295, %s908_s12   ;;  %p855_p0 = scmp.ge.s32.totalorder %s908_s12, 1  ;;  %s908_s12 = sphi %s946_s12, %s13_s12  }
   0x2   : > { %p137_p1 = scmp.lt.s32.totalorder %s908_s12, 3 }
   0x4   : > { %p138_p2 = pnand %p855_p0, %p137_p1 }
   0x5   : > { %p161_p3 = scmp.lt.s32.totalorder (!%p138_p2), %s851_s13, 1  ;;  %s912_s18 = smov (!%p138_p2), 17  }
   0x6   : > { %141 = sbr.rel (%p138_p2) target bundleno = 1004 (0x3ec), region = 32  ;;  %s913_s19 = smov (!%p138_p2), 32  }
   0x7   : > { %s914_s20 = smov (!%p138_p2), 34   ;;  %s915_s21 = smov (!%p138_p2), 18  }
   0x8   : > { %s916_s22 = smov (!%p138_p2), 2   ;;  %s917_s23 = smov (!%p138_p2), 16  }
   0x9   : > { %s918_s24 = smov (!%p138_p2), 111   ;;  %s919_s25 = smov (!%p138_p2), 95  }
   0xa   : > { %s920_s26 = smov (!%p138_p2), 96   ;;  %s921_s27 = smov (!%p138_p2), 127  }
   0xb   : > { %v171_v0 = vlaneseq  ;;  %vm211_vm0 = vcmask 273408   ;;  %v910_v1 = vmov 0.0   ;;  %s1151_s13 = smov (!%p161_p3, %s851_s13), 1  ;;  %v911_v3 = vmov 1.0   ;;  %s922_s28 = smov 126  }
   0xc   : > { %210 = vst [vmem:[#allocation2] sm:$0xff] %v910_v1  ;;  %220 = vst [vmem:[#allocation3 + $0x40] sm:$0xe0] %v910_v1  ;;  %523 = vmatprep.mubr.f32.mxu0 %v910_v1  ;;  %778 = vmatprep.mubr.f32.mxu1 %v910_v1  ;;  %s868_s14 = sshll.u32 %s1151_s13, 3  ;;  %vm231_vm6 = vcmask 1043592   ;;  %vm232_vm7 = vcmask 1047556  }
   0xd   : > { %221 = vst [vmem:[#allocation3 + $0x48] sm:$0xe0] %v910_v1  ;;  %212 = vst.msk [vmem:[#allocation2 + $0x8] sm:$0xf] %vm211_vm0, %v910_v1  ;;  %v172_v2 = vand.u32 127, %v171_v0  ;;  %vm215_vm1 = vcmp.lt.s32.totalorder %v171_v0, 256  ;;  %s165_s17 = scalar_lea.vmem %s1144_s0, %s868_s14  ;;  %s170_s11 = scalar_lea.vmem %s1147_s3, %s868_s14 }
   0xe   : > { %218 = vst.msk [vmem:[#allocation3 + $0x44] ss:$8 sm:$0x3] %vm215_vm1, %v911_v3  ;;  %v962_v6 = vld [vmem:[%s165_s17] sm:$0xff]  ;;  %vm227_vm8 = vcmask 138240   ;;  %vm235_vm9 = vcmask 134144   ;;  %vm970_vm10 = vmor %vm232_vm7, %vm231_vm6 }
   0xf   : > { %v173_v4 = vadd.s32 128, %v172_v2  ;;  %v178_v5 = vand.u32 15, %v172_v2  ;;  %224 = vrot.lane.b32.xlu0 %v962_v6, %s912_s18  ;;  %vm422_vm11 = vcmask 277504   ;;  %vm376_vm12 = vcmask 261120   ;;  %s923_s29 = smov 94   ;;  %s924_s30 = smov 110  }
  0x10   : > { %vm348_vm13 = vcmask 146432   ;;  %vm302_vm14 = vcmask 130048   ;;  %vm275_vm15 = vcmask 15360   ;;  %s925_s4 = smov 112   ;;  %vm410_vm0 = vcmask 777216  }
  0x11   : > { %v185_v7 = vand.u32 15, %v173_v4  ;;  %vm198_vm2 = vcmp.ge.s32.totalorder %v178_v5, 1  ;;  %vm204_vm3 = vcmp.le.s32.totalorder %v178_v5, 14  ;;  %vm336_vm1 = vcmask 908288  }
  0x12   : > { %v860_v8 = vsel %vm198_vm2, 1.0, %v910_v1  ;;  %v862_v9 = vsel %vm204_vm3, 1.0, %v910_v1  ;;  %vm364_vm2 = vcmask 900096   ;;  %vm318_vm3 = vcmask 916480  }
  0x13   : > { %vm199_vm4 = vcmp.ge.s32.totalorder %v185_v7, 1  ;;  %vm205_vm5 = vcmp.le.s32.totalorder %v185_v7, 14  ;;  %vm290_vm6 = vcmask 1031168   ;;  %vm260_vm7 = vcmask 1039360  }
  0x14   : > { %v861_v10 = vsel %vm199_vm4, 1.0, %v910_v1  ;;  %v863_v11 = vsel %vm205_vm5, 1.0, %v910_v1  ;;  %vm437_vm4 = vcmask 769024   ;;  %vm391_vm5 = vcmask 785408  }
  0x15   : > { %v966_v12 = vcombine.low %v860_v8, %v861_v10  ;;  %v271_v13 = vcombine.low %v862_v9, %v863_v11 }
  0x17   : > { %373 = vrot.lane.b32.xlu1 %v966_v12, %s913_s19  ;;  %419 = vrot.lane.b32.xlu0 %v271_v13, %s914_s20 }
  0x1b   : > { %345 = vrot.lane.b32.xlu1 %v271_v13, %s915_s21  ;;  %272 = vrot.lane.b32.xlu0 %v271_v13, %s916_s22 }
  0x1f   : > { %299 = vrot.lane.b32.xlu1 %v966_v12, %s917_s23 }
  0x81   : > { %v225_v14 = vpop.permute.xlu0 %224 }
  0x82   : > { %v226_v16 = vrot.slane %v225_v14, 4 }
  0x84   : > { %v228_v17 = vsel %vm227_vm8, %v226_v16, %v225_v14  ;;  %236 = vst.msk [vmem:[#allocation2 + $0x8] sm:$0xf] %vm235_vm9, %v226_v16 }
  0x85   : > { %234 = vst.msk [vmem:[#allocation2] sm:$0xff] %vm970_vm10, %v228_v17 }
  0x89   : > { %v374_v18 = vpop.permute.xlu1 %373  ;;  %v420_v19 = vpop.permute.xlu0 %419 }
  0x8a   : > { %v978_v20 = vrot.slane %v374_v18, 4  ;;  %v993_v29 = vrot.slane %v420_v19, 4 }
  0x8b   : > { %v326_v21 = vld [vmem:[#allocation2 + $0x8] sm:$0xf] }
  0x8c   : > { %v372_v22 = vld [vmem:[#allocation2 + $0x8] sm:$0xf]  ;;  %v980_v23 = vld [vmem:[#allocation2] sm:$0xff]  ;;  %334 = vrot.lane.b32.xlu0 %v326_v21, %s918_s24  ;;  %v1000_v35 = vsel %vm422_vm11, %v993_v29, %v420_v19  ;;  %v1004_v37 = vsel %vm376_vm12, %v978_v20, %v374_v18  ;;  %vm455_vm11 = vcmask 326656  }
  0x8d   : > { %406 = vrot.lane.b32.xlu1 %v980_v23, %s919_s25  ;;  %v381_v24 = vmul.f32 %v978_v20, %v372_v22  ;;  %v273_v25 = vpop.permute.xlu0 %272  ;;  %v242_v26 = vmul.f32 %v966_v12, %v980_v23  ;;  %v894_v28 = vld [vmem:[#allocation2 + $0x8] ss:$0 sps:$4 sm:$0xff]   ;;  %v346_v33 = vpop.permute.xlu1 %345  ;;  %v426_v38 = vmul.f32 %v1000_v35, %v980_v23  ;;  %v380_v40 = vmul.f32 %v1004_v37, %v980_v23 }
  0x8e   : > { %v991_v27 = vrot.slane %v273_v25, 4  ;;  %v268_v30 = vld [vmem:[#allocation2 + $0x8] sm:$0xf]  ;;  %v1010_v39 = vrot.slane %v346_v33, 4  ;;  %v402_v44 = vcombine.low %v980_v23, %v980_v23  ;;  %v329_v46 = vcombine.high %v980_v23, %v980_v23 }
  0x8f   : > { %v244_v31 = vcombine.high %v242_v26, %v242_v26  ;;  %246 = vst [vmem:[#allocation3] sm:$0xf] %v242_v26  ;;  %v418_v32 = vld [vmem:[#allocation2 + $0x8] sm:$0xf]  ;;  %v430_v56 = vcombine.high %v426_v38, %v426_v38  ;;  %v384_v59 = vcombine.high %v380_v40, %v380_v40 }
  0x90   : > { %389 = vrot.lane.b32.xlu0 %v381_v24, %s920_s26  ;;  %v280_v34 = vmul.f32 %v991_v27, %v268_v30  ;;  %v427_v36 = vmul.f32 %v993_v29, %v418_v32  ;;  %v344_v42 = vld [vmem:[#allocation2 + $0x8] sm:$0xf]  ;;  %v1024_v47 = vsel %vm348_vm13, %v1010_v39, %v346_v33  ;;  %v1039_v55 = vsel %vm275_vm15, %v991_v27, %v273_v25 }
  0x91   : > { %330 = vrot.lane.b32.xlu1 %v980_v23, %s918_s24  ;;  %247 = vst [vmem:[#allocation3 + $0x8] sm:$0xf] %v244_v31  ;;  %v300_v41 = vpop.permute.xlu1 %299  ;;  %v353_v45 = vmul.f32 %v1010_v39, %v344_v42  ;;  %v298_v48 = vld [vmem:[#allocation2 + $0x8] sm:$0xf]  ;;  %v352_v51 = vmul.f32 %v1024_v47, %v980_v23  ;;  %v279_v57 = vmul.f32 %v1039_v55, %v980_v23 }
  0x92   : > { %v1016_v43 = vrot.slane %v300_v41, 4  ;;  %v897_v62 = vld [vmem:[#allocation2 + $0x8] ss:$0 sps:$4 sm:$0xff]  }
  0x93   : > { %v357_v49 = vcombine.low %v353_v45, %v353_v45  ;;  %v356_v58 = vcombine.low %v352_v51, %v352_v51  ;;  %v283_v61 = vcombine.high %v279_v57, %v279_v57 }
  0x94   : > { %408 = vrot.lane.b32.xlu0 %v894_v28, %s919_s25  ;;  %v307_v50 = vmul.f32 %v1016_v43, %v298_v48  ;;  %v1032_v52 = vsel %vm302_vm14, %v1016_v43, %v300_v41 }
  0x95   : > { %256 = vrot.lane.b32.xlu1 %v980_v23, %s921_s27  ;;  %v306_v54 = vmul.f32 %v1032_v52, %v980_v23 }
  0x96   : > { %v311_v53 = vcombine.low %v307_v50, %v307_v50 }
  0x97   : > { %v310_v60 = vcombine.low %v306_v54, %v306_v54 }
  0x98   : > { %288 = vrot.lane.b32.xlu0 %v280_v34, %s922_s28 }
  0x99   : > { %435 = vrot.lane.b32.xlu1 %v427_v36, %s923_s29 }
  0x9c   : > { %431 = vrot.lane.b32.xlu0 %v426_v38, %s923_s29 }
  0x9d   : > { %385 = vrot.lane.b32.xlu1 %v380_v40, %s920_s26 }
  0xa0   : > { %404 = vrot.lane.b32.xlu0 %v402_v44, %s919_s25 }
  0xa1   : > { %332 = vrot.lane.b32.xlu1 %v329_v46, %s918_s24 }
  0xa4   : > { %362 = vrot.lane.b32.xlu0 %v357_v49, %s924_s30 }
  0xa5   : > { %360 = vrot.lane.b32.xlu1 %v352_v51, %s924_s30 }
  0xa8   : > { %316 = vrot.lane.b32.xlu0 %v311_v53, %s925_s4 }
  0xa9   : > { %314 = vrot.lane.b32.xlu1 %v306_v54, %s925_s4 }
  0xac   : > { %433 = vrot.lane.b32.xlu0 %v430_v56, %s923_s29 }
  0xad   : > { %284 = vrot.lane.b32.xlu1 %v279_v57, %s922_s28 }
  0xb0   : > { %358 = vrot.lane.b32.xlu0 %v356_v58, %s924_s30 }
  0xb1   : > { %387 = vrot.lane.b32.xlu1 %v384_v59, %s920_s26 }
  0xb4   : > { %312 = vrot.lane.b32.xlu0 %v310_v60, %s925_s4 }
  0xb5   : > { %286 = vrot.lane.b32.xlu1 %v283_v61, %s922_s28  ;;  %v444_v61 = vld [vmem:[%s1145_s1] sm:$0xff] }
  0xb8   : > { %258 = vrot.lane.b32.xlu0 %v897_v62, %s921_s27 }
  0xb9   : > { %254 = vrot.lane.b32.xlu1 %v402_v44, %s921_s27 }
  0xfe   : > { %v335_v63 = vpop.permute.xlu0 %334 }
  0xff   : > { %v407_v0 = vpop.permute.xlu1 %406 }
 0x102   : > { %v390_v1 = vpop.permute.xlu0 %389 }
 0x103   : > { %v331_v2 = vpop.permute.xlu1 %330 }
 0x106   : > { %v409_v3 = vpop.permute.xlu0 %408 }
 0x107   : > { %v412_v4 = vsel %vm410_vm0, %v407_v0, %v409_v3  ;;  %v257_v5 = vpop.permute.xlu1 %256 }
 0x108   : > { %416 = vst [vmem:[#allocation3 + $0x38] sm:$0xf0] %v412_v4 }
 0x10a   : > { %v289_v7 = vpop.permute.xlu0 %288 }
 0x10b   : > { %v436_v8 = vpop.permute.xlu1 %435 }
 0x10e   : > { %v432_v9 = vpop.permute.xlu0 %431 }
 0x10f   : > { %v386_v10 = vpop.permute.xlu1 %385 }
 0x112   : > { %v405_v11 = vpop.permute.xlu0 %404 }
 0x113   : > { %v411_v13 = vsel %vm410_vm0, %v405_v11, %v407_v0  ;;  %v333_v14 = vpop.permute.xlu1 %332 }
 0x114   : > { %415 = vst [vmem:[#allocation3 + $0x30] sm:$0xf0] %v411_v13  ;;  %v337_v16 = vsel %vm336_vm1, %v331_v2, %v333_v14  ;;  %v338_v17 = vsel %vm336_vm1, %v333_v14, %v335_v63 }
 0x115   : > { %341 = vst [vmem:[#allocation3 + $0x20] sm:$0xf] %v337_v16  ;;  %342 = vst [vmem:[#allocation3 + $0x28] sm:$0xf] %v338_v17 }
 0x116   : > { %v363_v18 = vpop.permute.xlu0 %362 }
 0x117   : > { %v361_v19 = vpop.permute.xlu1 %360 }
 0x118   : > { %v366_v21 = vsel %vm364_vm2, %v361_v19, %v363_v18 }
 0x119   : > { %370 = vst [vmem:[#allocation3 + $0x28] sm:$0xf0] %v366_v21 }
 0x11a   : > { %v317_v22 = vpop.permute.xlu0 %316 }
 0x11b   : > { %v315_v23 = vpop.permute.xlu1 %314 }
 0x11c   : > { %v320_v24 = vsel %vm318_vm3, %v315_v23, %v317_v22 }
 0x11d   : > { %324 = vst [vmem:[#allocation3 + $0x18] sm:$0xf0] %v320_v24 }
 0x11e   : > { %v434_v25 = vpop.permute.xlu0 %433 }
 0x11f   : > { %v438_v26 = vsel %vm437_vm4, %v432_v9, %v434_v25  ;;  %v439_v28 = vsel %vm437_vm4, %v434_v25, %v436_v8  ;;  %v285_v30 = vpop.permute.xlu1 %284 }
 0x120   : > { %442 = vst [vmem:[#allocation3 + $0x40] sm:$0xf] %v438_v26  ;;  %443 = vst [vmem:[#allocation3 + $0x48] sm:$0xf] %v439_v28  ;;  %v450_v56 = vld [vmem:[#allocation3 + $0x28] sm:$0xff] }
 0x122   : > { %v359_v31 = vpop.permute.xlu0 %358 }
 0x123   : > { %v365_v32 = vsel %vm364_vm2, %v359_v31, %v361_v19  ;;  %v388_v33 = vpop.permute.xlu1 %387 }
 0x124   : > { %369 = vst [vmem:[#allocation3 + $0x20] sm:$0xf0] %v365_v32  ;;  %v392_v34 = vsel %vm391_vm5, %v386_v10, %v388_v33  ;;  %v393_v36 = vsel %vm391_vm5, %v388_v33, %v390_v1 }
 0x125   : > { %396 = vst [vmem:[#allocation3 + $0x30] sm:$0xf] %v392_v34  ;;  %397 = vst [vmem:[#allocation3 + $0x38] sm:$0xf] %v393_v36 }
 0x126   : > { %v313_v38 = vpop.permute.xlu0 %312 }
 0x127   : > { %v319_v40 = vsel %vm318_vm3, %v313_v38, %v315_v23  ;;  %v287_v41 = vpop.permute.xlu1 %286  ;;  %v454_v42 = vld [vmem:[#allocation3 + $0x48] sm:$0xff]  ;;  %v453_v44 = vld [vmem:[#allocation3 + $0x40] sm:$0xff] }
 0x128   : > { %323 = vst [vmem:[#allocation3 + $0x10] sm:$0xf0] %v319_v40  ;;  %v291_v45 = vsel %vm290_vm6, %v285_v30, %v287_v41  ;;  %v292_v46 = vsel %vm290_vm6, %v287_v41, %v289_v7  ;;  %481 = vmatprep.subr.mxu0 %v454_v42 }
 0x129   : > { %295 = vst [vmem:[#allocation3 + $0x10] sm:$0xf] %v291_v45  ;;  %296 = vst [vmem:[#allocation3 + $0x18] sm:$0xf] %v292_v46  ;;  %482 = vmatpush1.msra.mxu0 %v453_v44 }
 0x12a   : > { %v259_v48 = vpop.permute.xlu0 %258 }
 0x12b   : > { %v262_v49 = vsel %vm260_vm7, %v257_v5, %v259_v48  ;;  %v255_v50 = vpop.permute.xlu1 %254  ;;  %v449_v57 = vld [vmem:[#allocation3 + $0x20] sm:$0xff] }
 0x12c   : > { %266 = vst [vmem:[#allocation3 + $0x8] sm:$0xf0] %v262_v49  ;;  %v261_v51 = vsel %vm260_vm7, %v255_v50, %v257_v5  ;;  %v452_v53 = vld [vmem:[#allocation3 + $0x38] sm:$0xff]  ;;  %v451_v54 = vld [vmem:[#allocation3 + $0x30] sm:$0xff] }
 0x12d   : > { %265 = vst [vmem:[#allocation3] sm:$0xf0] %v261_v51  ;;  %483 = vmatprep.subr.mxu0 %v452_v53 }
 0x12e   : > { %484 = vmatpush1.msra.mxu0 %v451_v54 }
 0x12f   : > { %485 = vmatprep.subr.mxu0 %v450_v56 }
 0x130   : > { %486 = vmatpush1.msra.mxu0 %v449_v57  ;;  %v448_v58 = vld [vmem:[#allocation3 + $0x18] sm:$0xff]  ;;  %v447_v59 = vld [vmem:[#allocation3 + $0x10] sm:$0xff] }
 0x131   : > { %487 = vmatprep.subr.mxu0 %v448_v58 }
 0x132   : > { %488 = vmatpush1.msra.mxu0 %v447_v59 }
 0x133   : > { %v446_v60 = vld [vmem:[#allocation3 + $0x8] sm:$0xff] }
 0x134   : > { %489 = vmatprep.subr.mxu0 %v446_v60  ;;  %v445_v62 = vld [vmem:[#allocation3] sm:$0xff] }
 0x135   : > { %490 = vmatpush1.msra.mxu0 %v445_v62 }
 0x136   : > { %864 = vmatmul.mubr.msk.f32.vlgmr.msra.gmra.mxu0 %vm455_vm11, %v444_v61 }
 0x1f6   : > { %v525_v63 = vpop.f32.mrf.mxu0 }
 0x1f7   : > { %v530_v1 = vmax.f32 %v525_v63, 0.0 }
 0x1f8   : > { %v527_v0 = vpop.f32.mrf.mxu0 }
 0x1f9   : > { %v531_v2 = vmax.f32 %v527_v0, 0.0 }
 0x1fb   : > { %v534_v3 = vcombine.low %v530_v1, %v531_v2 }
 0x1fd   : > { %535 = vrot.lane.b32.xlu0 %v534_v3, %s912_s18 }
 0x26f   : > { %v536_v4 = vpop.permute.xlu0 %535 }
 0x270   : > { %v537_v5 = vrot.slane %v536_v4, 4 }
 0x272   : > { %v538_v7 = vsel %vm227_vm8, %v537_v5, %v536_v4  ;;  %542 = vst.msk [vmem:[#allocation2 + $0x8] sm:$0xf] %vm235_vm9, %v537_v5 }
 0x273   : > { %541 = vst.msk [vmem:[#allocation2] sm:$0xff] %vm970_vm10, %v538_v7 }
 0x279   : > { %v608_v8 = vld [vmem:[#allocation2 + $0x8] sm:$0xf] }
 0x27a   : > { %v645_v9 = vld [vmem:[#allocation2 + $0x8] sm:$0xf]  ;;  %616 = vrot.lane.b32.xlu1 %v608_v8, %s918_s24  ;;  %v663_v10 = vld [vmem:[#allocation2] sm:$0xff] }
 0x27b   : > { %671 = vrot.lane.b32.xlu0 %v663_v10, %s919_s25  ;;  %v647_v11 = vmul.f32 %v645_v9, %v978_v20  ;;  %v544_v13 = vmul.f32 %v663_v10, %v966_v12  ;;  %v900_v14 = vld [vmem:[#allocation2 + $0x8] ss:$0 sps:$4 sm:$0xff]   ;;  %v683_v12 = vmul.f32 %v663_v10, %v1000_v35  ;;  %v646_v19 = vmul.f32 %v663_v10, %v1004_v37 }
 0x27c   : > { %v569_v15 = vld [vmem:[#allocation2 + $0x8] sm:$0xf]  ;;  %v667_v22 = vcombine.low %v663_v10, %v663_v10  ;;  %v611_v24 = vcombine.high %v663_v10, %v663_v10  ;;  %v626_v35 = vmul.f32 %v663_v10, %v1024_v47  ;;  %v589_v26 = vmul.f32 %v663_v10, %v1032_v52 }
 0x27d   : > { %v546_v16 = vcombine.high %v544_v13, %v544_v13  ;;  %548 = vst [vmem:[#allocation3] sm:$0xf] %v544_v13  ;;  %v682_v17 = vld [vmem:[#allocation2 + $0x8] sm:$0xf]  ;;  %v571_v18 = vmul.f32 %v569_v15, %v991_v27  ;;  %v570_v28 = vmul.f32 %v663_v10, %v1039_v55  ;;  %v650_v47 = vcombine.high %v646_v19, %v646_v19 }
 0x27e   : > { %655 = vrot.lane.b32.xlu1 %v647_v11, %s920_s26  ;;  %v684_v20 = vmul.f32 %v682_v17, %v993_v29  ;;  %v625_v21 = vld [vmem:[#allocation2 + $0x8] sm:$0xf]  ;;  %v593_v30 = vcombine.low %v589_v26, %v589_v26 }
 0x27f   : > { %612 = vrot.lane.b32.xlu0 %v663_v10, %s918_s24  ;;  %549 = vst [vmem:[#allocation3 + $0x8] sm:$0xf] %v546_v16  ;;  %v627_v23 = vmul.f32 %v625_v21, %v1010_v39  ;;  %v588_v27 = vld [vmem:[#allocation2 + $0x8] sm:$0xf]  ;;  %v687_v39 = vcombine.high %v683_v12, %v683_v12  ;;  %v574_v31 = vcombine.high %v570_v28, %v570_v28 }
 0x280   : > { %v590_v25 = vmul.f32 %v588_v27, %v1016_v43  ;;  %v630_v43 = vcombine.low %v626_v35, %v626_v35  ;;  %v901_v52 = vld [vmem:[#allocation2 + $0x8] ss:$0 sps:$4 sm:$0xff]  }
 0x281   : > { %v631_v29 = vcombine.low %v627_v23, %v627_v23 }
 0x282   : > { %673 = vrot.lane.b32.xlu1 %v900_v14, %s919_s25  ;;  %v594_v37 = vcombine.low %v590_v25, %v590_v25 }
 0x283   : > { %558 = vrot.lane.b32.xlu0 %v663_v10, %s921_s27 }
 0x286   : > { %579 = vrot.lane.b32.xlu1 %v571_v18, %s922_s28 }
 0x287   : > { %692 = vrot.lane.b32.xlu0 %v684_v20, %s923_s29 }
 0x28a   : > { %688 = vrot.lane.b32.xlu1 %v683_v12, %s923_s29 }
 0x28b   : > { %651 = vrot.lane.b32.xlu0 %v646_v19, %s920_s26 }
 0x28e   : > { %669 = vrot.lane.b32.xlu1 %v667_v22, %s919_s25 }
 0x28f   : > { %614 = vrot.lane.b32.xlu0 %v611_v24, %s918_s24  ;;  %v700_v24 = vld [vmem:[%s1146_s2] sm:$0xff] }
 0x292   : > { %636 = vrot.lane.b32.xlu1 %v631_v29, %s924_s30  ;;  %v787_v29 = vcombine.high %v962_v6, %v962_v6 }
 0x293   : > { %634 = vrot.lane.b32.xlu0 %v626_v35, %s924_s30 }
 0x296   : > { %599 = vrot.lane.b32.xlu1 %v594_v37, %s925_s4 }
 0x297   : > { %597 = vrot.lane.b32.xlu0 %v589_v26, %s925_s4 }
 0x29a   : > { %690 = vrot.lane.b32.xlu1 %v687_v39, %s923_s29 }
 0x29b   : > { %575 = vrot.lane.b32.xlu0 %v570_v28, %s922_s28 }
 0x29e   : > { %632 = vrot.lane.b32.xlu1 %v630_v43, %s924_s30 }
 0x29f   : > { %653 = vrot.lane.b32.xlu0 %v650_v47, %s920_s26 }
 0x2a2   : > { %595 = vrot.lane.b32.xlu1 %v593_v30, %s925_s4 }
 0x2a3   : > { %577 = vrot.lane.b32.xlu0 %v574_v31, %s922_s28 }
 0x2a6   : > { %560 = vrot.lane.b32.xlu1 %v901_v52, %s921_s27 }
 0x2a7   : > { %556 = vrot.lane.b32.xlu0 %v667_v22, %s921_s27 }
 0x2ec   : > { %v617_v55 = vpop.permute.xlu1 %616 }
 0x2ed   : > { %v672_v32 = vpop.permute.xlu0 %671 }
 0x2f0   : > { %v656_v33 = vpop.permute.xlu1 %655 }
 0x2f1   : > { %v613_v34 = vpop.permute.xlu0 %612 }
 0x2f4   : > { %v674_v36 = vpop.permute.xlu1 %673 }
 0x2f5   : > { %v676_v38 = vsel %vm410_vm0, %v672_v32, %v674_v36  ;;  %v559_v40 = vpop.permute.xlu0 %558 }
 0x2f6   : > { %680 = vst [vmem:[#allocation3 + $0x38] sm:$0xf0] %v676_v38 }
 0x2f8   : > { %v580_v41 = vpop.permute.xlu1 %579 }
 0x2f9   : > { %v693_v42 = vpop.permute.xlu0 %692 }
 0x2fc   : > { %v689_v44 = vpop.permute.xlu1 %688 }
 0x2fd   : > { %v652_v45 = vpop.permute.xlu0 %651 }
 0x300   : > { %v670_v46 = vpop.permute.xlu1 %669 }
 0x301   : > { %v675_v48 = vsel %vm410_vm0, %v670_v46, %v672_v32  ;;  %v615_v49 = vpop.permute.xlu0 %614 }
 0x302   : > { %679 = vst [vmem:[#allocation3 + $0x30] sm:$0xf0] %v675_v48  ;;  %v618_v50 = vsel %vm336_vm1, %v613_v34, %v615_v49  ;;  %v619_v51 = vsel %vm336_vm1, %v615_v49, %v617_v55 }
 0x303   : > { %622 = vst [vmem:[#allocation3 + $0x20] sm:$0xf] %v618_v50  ;;  %623 = vst [vmem:[#allocation3 + $0x28] sm:$0xf] %v619_v51 }
 0x304   : > { %v637_v53 = vpop.permute.xlu1 %636 }
 0x305   : > { %v635_v54 = vpop.permute.xlu0 %634 }
 0x306   : > { %v639_v56 = vsel %vm364_vm2, %v635_v54, %v637_v53 }
 0x307   : > { %643 = vst [vmem:[#allocation3 + $0x28] sm:$0xf0] %v639_v56 }
 0x308   : > { %v600_v57 = vpop.permute.xlu1 %599 }
 0x309   : > { %v598_v58 = vpop.permute.xlu0 %597 }
 0x30a   : > { %v602_v59 = vsel %vm318_vm3, %v598_v58, %v600_v57 }
 0x30b   : > { %606 = vst [vmem:[#allocation3 + $0x18] sm:$0xf0] %v602_v59 }
 0x30c   : > { %v691_v60 = vpop.permute.xlu1 %690 }
 0x30d   : > { %v694_v61 = vsel %vm437_vm4, %v689_v44, %v691_v60  ;;  %v695_v62 = vsel %vm437_vm4, %v691_v60, %v693_v42  ;;  %v576_v63 = vpop.permute.xlu0 %575 }
 0x30e   : > { %698 = vst [vmem:[#allocation3 + $0x40] sm:$0xf] %v694_v61  ;;  %699 = vst [vmem:[#allocation3 + $0x48] sm:$0xf] %v695_v62  ;;  %v706_v12 = vld [vmem:[#allocation3 + $0x28] sm:$0xff] }
 0x310   : > { %v633_v0 = vpop.permute.xlu1 %632 }
 0x311   : > { %v638_v1 = vsel %vm364_vm2, %v633_v0, %v635_v54  ;;  %v654_v2 = vpop.permute.xlu0 %653 }
 0x312   : > { %642 = vst [vmem:[#allocation3 + $0x20] sm:$0xf0] %v638_v1  ;;  %v657_v3 = vsel %vm391_vm5, %v652_v45, %v654_v2  ;;  %v658_v4 = vsel %vm391_vm5, %v654_v2, %v656_v33 }
 0x313   : > { %661 = vst [vmem:[#allocation3 + $0x30] sm:$0xf] %v657_v3  ;;  %662 = vst [vmem:[#allocation3 + $0x38] sm:$0xf] %v658_v4 }
 0x314   : > { %v596_v5 = vpop.permute.xlu1 %595 }
 0x315   : > { %v601_v7 = vsel %vm318_vm3, %v596_v5, %v598_v58  ;;  %v578_v8 = vpop.permute.xlu0 %577  ;;  %v710_v9 = vld [vmem:[#allocation3 + $0x48] sm:$0xff]  ;;  %v709_v10 = vld [vmem:[#allocation3 + $0x40] sm:$0xff] }
 0x316   : > { %605 = vst [vmem:[#allocation3 + $0x10] sm:$0xf0] %v601_v7  ;;  %v581_v11 = vsel %vm290_vm6, %v576_v63, %v578_v8  ;;  %v582_v13 = vsel %vm290_vm6, %v578_v8, %v580_v41  ;;  %736 = vmatprep.subr.mxu1 %v710_v9 }
 0x317   : > { %585 = vst [vmem:[#allocation3 + $0x10] sm:$0xf] %v581_v11  ;;  %586 = vst [vmem:[#allocation3 + $0x18] sm:$0xf] %v582_v13  ;;  %737 = vmatpush1.msra.mxu1 %v709_v10 }
 0x318   : > { %v561_v14 = vpop.permute.xlu1 %560 }
 0x319   : > { %v563_v16 = vsel %vm260_vm7, %v559_v40, %v561_v14  ;;  %v557_v15 = vpop.permute.xlu0 %556  ;;  %v705_v19 = vld [vmem:[#allocation3 + $0x20] sm:$0xff] }
 0x31a   : > { %567 = vst [vmem:[#allocation3 + $0x8] sm:$0xf0] %v563_v16  ;;  %v562_v17 = vsel %vm260_vm7, %v557_v15, %v559_v40  ;;  %v708_v18 = vld [vmem:[#allocation3 + $0x38] sm:$0xff]  ;;  %v707_v20 = vld [vmem:[#allocation3 + $0x30] sm:$0xff] }
 0x31b   : > { %566 = vst [vmem:[#allocation3] sm:$0xf0] %v562_v17  ;;  %738 = vmatprep.subr.mxu1 %v708_v18 }
 0x31c   : > { %739 = vmatpush1.msra.mxu1 %v707_v20 }
 0x31d   : > { %740 = vmatprep.subr.mxu1 %v706_v12 }
 0x31e   : > { %741 = vmatpush1.msra.mxu1 %v705_v19  ;;  %v704_v21 = vld [vmem:[#allocation3 + $0x18] sm:$0xff]  ;;  %v703_v22 = vld [vmem:[#allocation3 + $0x10] sm:$0xff] }
 0x31f   : > { %742 = vmatprep.subr.mxu1 %v704_v21 }
 0x320   : > { %743 = vmatpush1.msra.mxu1 %v703_v22 }
 0x321   : > { %v702_v23 = vld [vmem:[#allocation3 + $0x8] sm:$0xff] }
 0x322   : > { %744 = vmatprep.subr.mxu1 %v702_v23  ;;  %v701_v27 = vld [vmem:[#allocation3] sm:$0xff] }
 0x323   : > { %745 = vmatpush1.msra.mxu1 %v701_v27 }
 0x324   : > { %865 = vmatmul.mubr.msk.f32.vlgmr.msra.gmra.mxu1 %vm455_vm11, %v700_v24 }
 0x3e4   : > { %v780_v25 = vpop.f32.mrf.mxu1 }
 0x3e5   : > { %v789_v37 = vadd.f32 %v780_v25, %v962_v6 }
 0x3e6   : > { %v782_v35 = vpop.f32.mrf.mxu1 }
 0x3e7   : > { %v790_v26 = vadd.f32 %v787_v29, %v782_v35 }
 0x3e9   : > { %v793_v39 = vcombine.low %v789_v37, %v790_v26 }
 0x3eb   : > { %795 = vst [vmem:[%s170_s11] sm:$0xff] %v793_v39 }
 0x3ec PF: > { %s13_s12 = sadd.s32 1, %s908_s12  }
 0x3ed   : > { %p10_p4 = scmp.ge.s32.totalorder %s13_s12, 4  }
 0x3ef   :  { %12 = sbr.rel (!%p10_p4) target bundleno = 1 (0x1), region = 63 }

</bundles_post_ra>
